<compile_context>
chip_gen: v7x
topology: tpu7x:2x2x1
jax: 0.10.0
libtpu: 0.0.40
codegen_flags: <defaults>
</compile_context>

<pallas_src>
import functools

import jax
import jax.numpy as jnp
from jax import lax
from jax.experimental import pallas as pl
from jax.experimental.pallas import tpu as pltpu

_SUBLANE = 8
_TWO_PI = 6.283185307179586
_INV_2_24 = 1.0 / (1 << 24)


def _round_up(a, b):
    return -(-a // b) * b


def _generation_tiling():
    """Tile-size targets from the TPU generation (VMEM capacity as proxy)."""
    target_block_bytes, min_grid_steps, vmem_cap = 4 << 20, 4, 48 << 20
    try:
        vmem = int(pltpu.get_tpu_info().vmem_capacity_bytes)
        if vmem <= (64 << 20):
            # v7x-class: 64 MiB VMEM/TC, 2 TCs share the parallel grid axis ->
            # smaller blocks, longer grid so both cores get balanced work.
            target_block_bytes, min_grid_steps, vmem_cap = 2 << 20, 8, 40 << 20
        else:
            # v5e / v6e: 128 MiB physical VMEM, single TC -> bigger blocks to
            # amortize the ~0.35 us per-grid-step overhead; explicit raise over
            # the 16 / 32 MiB scoped defaults.
            target_block_bytes, min_grid_steps, vmem_cap = 6 << 20, 3, 96 << 20
    except Exception:
        pass  # not on a TPU (e.g. interpret mode): keep safe defaults
    return target_block_bytes, min_grid_steps, vmem_cap


def _hash_u32(v):
    """lowbias32 integer hash -- plain VPU int ops (compiled + interpreted)."""
    v = v ^ (v >> jnp.uint32(16))
    v = v * jnp.uint32(0x7FEB352D)
    v = v ^ (v >> jnp.uint32(15))
    v = v * jnp.uint32(0x846CA68B)
    v = v ^ (v >> jnp.uint32(16))
    return v


def _bits_to_unit_open(bits):
    """uint32 bits -> float32 uniform in the open interval (0, 1)."""
    return ((bits >> jnp.uint32(8)).astype(jnp.int32).astype(jnp.float32)
            * _INV_2_24 + 0.5 * _INV_2_24)


def _gaussian_dropout2d_kernel(seed_ref, x_ref, ab_ref, o_ref, *, hw):
    """One (tm, HW) row block: o = a*x + b*(mean_row + std_row * z)."""
    tm = x_ref.shape[0]

    # ---- per-row statistics: single pass (sum + sum of squares) in f32 ----
    x = x_ref[...].astype(jnp.float32)                        # (tm, hw)
    s = jnp.sum(x, axis=-1, keepdims=True)
    ss = jnp.sum(x * x, axis=-1, keepdims=True)
    mean = s * (1.0 / hw)
    var = (ss - mean * s) * (1.0 / max(hw - 1, 1))            # (ss - n*mean^2)/(n-1)
    std = jnp.maximum(jnp.sqrt(jnp.maximum(var, 0.0)), 1e-6)  # torch.clamp(std, 1e-6)

    # ---- standard-normal field generated on-chip (no HBM noise array) -----
    # Counter-based PRNG: per-element counter mixes (seed, global row, column)
    # so every grid step / megacore shard gets an independent stream.
    seed = seed_ref[0].astype(jnp.uint32) * jnp.uint32(0x9E3779B1)
    row = (lax.broadcasted_iota(jnp.int32, x.shape, 0)
           + pl.program_id(0) * tm).astype(jnp.uint32)
    col = lax.broadcasted_iota(jnp.int32, x.shape, 1).astype(jnp.uint32)
    ctr = row * jnp.uint32(hw) + col + seed
    u1 = _bits_to_unit_open(_hash_u32(ctr))
    u2 = _bits_to_unit_open(_hash_u32(ctr ^ jnp.uint32(0x85EBCA77)))
    # Box-Muller -> exact N(0, 1).
    # TODO(synk): if a v7x bundle profile shows the single EUP (log/sqrt/cos)
    # as the binding slot, swap for a VPU-only approximation (sum-of-uniforms).
    z = jnp.sqrt(-2.0 * jnp.log(u1)) * jnp.cos(_TWO_PI * u2)

    # ---- fused blend: a = keep*sl, b = (1-keep)*(1-sl) pre-folded ----------
    ab = ab_ref[...]                                          # (tm, 2) f32
    a = ab[:, 0:1]
    b = ab[:, 1:2]
    o_ref[...] = (a * x + b * (mean + std * z)).astype(o_ref.dtype)


def gaussian_dropout2d(x, key, p=0.5, signal_to_noise=(0.1, 0.9), training=True):
    """JAX/Pallas equivalent of GaussianDropout2d.forward. Fully jittable."""
    if not training:
        return x

    B, C, H, W = x.shape
    BC, HW = B * C, H * W
    k_mask, k_sl, k_seed = jax.random.split(key, 3)

    # Per-(batch, channel) keep mask; resample while *all* channels are kept
    # (jittable replacement for torch's host-side `while torch.all(mask)`).
    def _draw(k):
        k, sub = jax.random.split(k)
        return k, jax.random.uniform(sub, (BC,)) > p

    _, mask = lax.while_loop(lambda s: jnp.all(s[1]),
                             lambda s: _draw(s[0]), _draw(k_mask))
    keep = mask.astype(jnp.float32)

    lo, hi = signal_to_noise
    sl = jax.random.uniform(k_sl, (BC,), dtype=jnp.float32) * (hi - lo) + lo
    a = keep * sl                           # coefficient of the signal
    b = (1.0 - keep) * (1.0 - sl)           # coefficient of the noise
    ab = jnp.stack([a, b], axis=-1).astype(jnp.float32)       # (BC, 2)

    # int32 seed for the in-kernel hash PRNG (scalar-prefetched into SMEM).
    seed = jax.random.randint(k_seed, (1,), 0, jnp.iinfo(jnp.int32).max,
                              dtype=jnp.int32)

    # --- tiling: full-width (lane) blocks, multiple-of-8 row tiles ---------
    target_bytes, min_steps, vmem_cap = _generation_tiling()
    bytes_per_row = HW * 4                  # kernel accumulates in f32
    tm = max(_SUBLANE,
             (target_bytes // max(bytes_per_row, 1)) // _SUBLANE * _SUBLANE)
    tm = min(tm, _round_up(BC, _SUBLANE))
    if BC >= _SUBLANE * min_steps:
        # Keep the grid >= a few steps so the pipeline / both v7x TCs have work.
        cap = max(_SUBLANE, (BC // min_steps) // _SUBLANE * _SUBLANE)
        tm = min(tm, cap)
    grid = (pl.cdiv(BC, tm),)               # Pallas masks the edge block

    # TODO(synk): for spatial sizes so large that even a tm=8 block blows the
    # v7x VMEM budget, switch to a 2-axis grid (rows, HW chunks, "arbitrary")
    # with per-row sum/sumsq accumulated in VMEM scratch and a second blend
    # sweep, decoupling tile size from H*W.
    block_bytes_f32 = tm * HW * 4
    vmem_limit = int(min(vmem_cap, max(32 << 20, 6 * block_bytes_f32)))

    x2 = x.reshape(BC, HW)
    kernel = functools.partial(_gaussian_dropout2d_kernel, hw=HW)

    out = pl.pallas_call(
        kernel,
        out_shape=jax.ShapeDtypeStruct((BC, HW), x.dtype),
        grid_spec=pltpu.PrefetchScalarGridSpec(
            num_scalar_prefetch=1,
            grid=grid,
            in_specs=[
                pl.BlockSpec((tm, HW), lambda i, *_: (i, 0)),  # x rows
                pl.BlockSpec((tm, 2), lambda i, *_: (i, 0)),   # (a, b) coeffs
            ],
            out_specs=pl.BlockSpec((tm, HW), lambda i, *_: (i, 0)),
        ),
        compiler_params=pltpu.CompilerParams(
            dimension_semantics=("parallel",),
            vmem_limit_bytes=vmem_limit,
        ),
    )(seed, x2, ab)

    return out.reshape(B, C, H, W)


if __name__ == "__main__":
    key = jax.random.PRNGKey(0)
    k_x, k_drop, k_x2, k_drop2, k_x3, k_drop3 = jax.random.split(key, 6)

    f = jax.jit(gaussian_dropout2d, static_argnames=("training",))

    # Shapes consistent with the module's use inside GlobalBlock skip paths.
    B, C, H, W = 2, 4, 16, 16
    x = jax.random.normal(k_x, (B, C, H, W), dtype=jnp.float32) * 2.0 + 0.5
    y = jax.block_until_ready(f(x, k_drop, 0.5, (0.1, 0.9), training=True))
    assert y.shape == x.shape and y.dtype == x.dtype
    assert bool(jnp.all(jnp.isfinite(y)))

    # Non-multiple-of-128 spatial size exercises the full-width (masked-lane)
    # block path with no host-side padding.
    xb = jax.random.normal(k_x2, (2, 4, 14, 14), dtype=jnp.float32)
    yb = jax.block_until_ready(f(xb, k_drop2, 0.5, (0.1, 0.9), training=True))
    assert yb.shape == xb.shape and yb.dtype == xb.dtype
    assert bool(jnp.all(jnp.isfinite(yb)))

    # Non-multiple-of-8 row count exercises the masked edge row-block.
    xc = jax.random.normal(k_x3, (2, 5, 16, 16), dtype=jnp.float32)
    yc = jax.block_until_ready(f(xc, k_drop3, 0.5, (0.1, 0.9), training=True))
    assert yc.shape == xc.shape and yc.dtype == xc.dtype
    assert bool(jnp.all(jnp.isfinite(yc)))

    # Eval mode is the identity.
    y_eval = jax.block_until_ready(f(x, k_drop, 0.5, (0.1, 0.9), training=False))
    assert bool(jnp.all(y_eval == x))

    print("KERNEL_OK")
</pallas_src>

<mosaic_0001>
module attributes {stable_mosaic.version = 11 : i64} {
  func.func @_gaussian_dropout2d_kernel(%arg0: i32, %arg1: memref<1xi32, #tpu.memory_space<smem>>, %arg2: memref<8x256xf32, #tpu.memory_space<vmem>>, %arg3: memref<8x2xf32, #tpu.memory_space<vmem>>, %arg4: memref<8x256xf32, #tpu.memory_space<vmem>>) attributes {dimension_semantics = [#tpu.dimension_semantics<parallel>], iteration_bounds = array<i64: 1>, scalar_prefetch = 1 : i64, scratch_operands = 0 : i64, tpu.core_type = #tpu.core_type<tc>, window_params = [{transform_indices = @transform_0, window_bounds = array<i64: 8, 256>}, {transform_indices = @transform_1, window_bounds = array<i64: 8, 2>}, {transform_indices = @transform_2, window_bounds = array<i64: 8, 256>}]} {
    %c0 = arith.constant 0 : index
    %c0_0 = arith.constant 0 : index
    %0 = vector.load %arg2[%c0, %c0_0] : memref<8x256xf32, #tpu.memory_space<vmem>>, vector<8x256xf32>
    %cst = arith.constant dense<0.000000e+00> : vector<8xf32>
    %1 = vector.multi_reduction <add>, %0, %cst [1] : vector<8x256xf32> to vector<8xf32>
    %2 = vector.shape_cast %1 : vector<8xf32> to vector<8x1xf32>
    %3 = arith.mulf %0, %0 : vector<8x256xf32>
    %cst_1 = arith.constant dense<0.000000e+00> : vector<8xf32>
    %4 = vector.multi_reduction <add>, %3, %cst_1 [1] : vector<8x256xf32> to vector<8xf32>
    %5 = vector.shape_cast %4 : vector<8xf32> to vector<8x1xf32>
    %cst_2 = arith.constant 3.906250e-03 : f32
    %6 = vector.broadcast %cst_2 : f32 to vector<8x1xf32>
    %7 = arith.mulf %2, %6 : vector<8x1xf32>
    %8 = arith.mulf %7, %2 : vector<8x1xf32>
    %9 = arith.subf %5, %8 : vector<8x1xf32>
    %cst_3 = arith.constant 0.00392156886 : f32
    %10 = vector.broadcast %cst_3 : f32 to vector<8x1xf32>
    %11 = arith.mulf %9, %10 : vector<8x1xf32>
    %cst_4 = arith.constant 0.000000e+00 : f32
    %12 = vector.broadcast %cst_4 : f32 to vector<8x1xf32>
    %13 = arith.maximumf %11, %12 : vector<8x1xf32>
    %14 = math.sqrt %13 : vector<8x1xf32>
    %cst_5 = arith.constant 9.99999997E-7 : f32
    %15 = vector.broadcast %cst_5 : f32 to vector<8x1xf32>
    %16 = arith.maximumf %14, %15 : vector<8x1xf32>
    %c0_6 = arith.constant 0 : index
    %17 = memref.load %arg1[%c0_6] : memref<1xi32, #tpu.memory_space<smem>>
    %c-1640531535_i32 = arith.constant -1640531535 : i32
    %18 = arith.muli %17, %c-1640531535_i32 : i32
    %19 = tpu.iota {dimensions = array<i32: 0>} : vector<8x256xi32>
    %c8_i32 = arith.constant 8 : i32
    %20 = arith.muli %arg0, %c8_i32 : i32
    %21 = vector.broadcast %20 : i32 to vector<8x256xi32>
    %22 = arith.addi %19, %21 : vector<8x256xi32>
    %23 = tpu.iota {dimensions = array<i32: 1>} : vector<8x256xi32>
    %c256_i32 = arith.constant 256 : i32
    %24 = vector.broadcast %c256_i32 : i32 to vector<8x256xi32>
    %25 = arith.muli %22, %24 : vector<8x256xi32>
    %26 = arith.addi %25, %23 : vector<8x256xi32>
    %27 = vector.broadcast %18 : i32 to vector<8x256xi32>
    %28 = arith.addi %26, %27 : vector<8x256xi32>
    %c16_i32 = arith.constant 16 : i32
    %29 = vector.broadcast %c16_i32 : i32 to vector<8x256xi32>
    %30 = arith.shrui %28, %29 : vector<8x256xi32>
    %31 = arith.xori %28, %30 : vector<8x256xi32>
    %c2146121005_i32 = arith.constant 2146121005 : i32
    %32 = vector.broadcast %c2146121005_i32 : i32 to vector<8x256xi32>
    %33 = arith.muli %31, %32 : vector<8x256xi32>
    %c15_i32 = arith.constant 15 : i32
    %34 = vector.broadcast %c15_i32 : i32 to vector<8x256xi32>
    %35 = arith.shrui %33, %34 : vector<8x256xi32>
    %36 = arith.xori %33, %35 : vector<8x256xi32>
    %c-2073254261_i32 = arith.constant -2073254261 : i32
    %37 = vector.broadcast %c-2073254261_i32 : i32 to vector<8x256xi32>
    %38 = arith.muli %36, %37 : vector<8x256xi32>
    %c16_i32_7 = arith.constant 16 : i32
    %39 = vector.broadcast %c16_i32_7 : i32 to vector<8x256xi32>
    %40 = arith.shrui %38, %39 : vector<8x256xi32>
    %41 = arith.xori %38, %40 : vector<8x256xi32>
    %c8_i32_8 = arith.constant 8 : i32
    %42 = vector.broadcast %c8_i32_8 : i32 to vector<8x256xi32>
    %43 = arith.shrui %41, %42 : vector<8x256xi32>
    %44 = arith.sitofp %43 : vector<8x256xi32> to vector<8x256xf32>
    %cst_9 = arith.constant 5.96046448E-8 : f32
    %45 = vector.broadcast %cst_9 : f32 to vector<8x256xf32>
    %46 = arith.mulf %44, %45 : vector<8x256xf32>
    %cst_10 = arith.constant 2.98023224E-8 : f32
    %47 = vector.broadcast %cst_10 : f32 to vector<8x256xf32>
    %48 = arith.addf %46, %47 : vector<8x256xf32>
    %c-2048144777_i32 = arith.constant -2048144777 : i32
    %49 = vector.broadcast %c-2048144777_i32 : i32 to vector<8x256xi32>
    %50 = arith.xori %28, %49 : vector<8x256xi32>
    %c16_i32_11 = arith.constant 16 : i32
    %51 = vector.broadcast %c16_i32_11 : i32 to vector<8x256xi32>
    %52 = arith.shrui %50, %51 : vector<8x256xi32>
    %53 = arith.xori %50, %52 : vector<8x256xi32>
    %c2146121005_i32_12 = arith.constant 2146121005 : i32
    %54 = vector.broadcast %c2146121005_i32_12 : i32 to vector<8x256xi32>
    %55 = arith.muli %53, %54 : vector<8x256xi32>
    %c15_i32_13 = arith.constant 15 : i32
    %56 = vector.broadcast %c15_i32_13 : i32 to vector<8x256xi32>
    %57 = arith.shrui %55, %56 : vector<8x256xi32>
    %58 = arith.xori %55, %57 : vector<8x256xi32>
    %c-2073254261_i32_14 = arith.constant -2073254261 : i32
    %59 = vector.broadcast %c-2073254261_i32_14 : i32 to vector<8x256xi32>
    %60 = arith.muli %58, %59 : vector<8x256xi32>
    %c16_i32_15 = arith.constant 16 : i32
    %61 = vector.broadcast %c16_i32_15 : i32 to vector<8x256xi32>
    %62 = arith.shrui %60, %61 : vector<8x256xi32>
    %63 = arith.xori %60, %62 : vector<8x256xi32>
    %c8_i32_16 = arith.constant 8 : i32
    %64 = vector.broadcast %c8_i32_16 : i32 to vector<8x256xi32>
    %65 = arith.shrui %63, %64 : vector<8x256xi32>
    %66 = arith.sitofp %65 : vector<8x256xi32> to vector<8x256xf32>
    %cst_17 = arith.constant 5.96046448E-8 : f32
    %67 = vector.broadcast %cst_17 : f32 to vector<8x256xf32>
    %68 = arith.mulf %66, %67 : vector<8x256xf32>
    %cst_18 = arith.constant 2.98023224E-8 : f32
    %69 = vector.broadcast %cst_18 : f32 to vector<8x256xf32>
    %70 = arith.addf %68, %69 : vector<8x256xf32>
    %71 = math.log %48 : vector<8x256xf32>
    %cst_19 = arith.constant -2.000000e+00 : f32
    %72 = vector.broadcast %cst_19 : f32 to vector<8x256xf32>
    %73 = arith.mulf %72, %71 : vector<8x256xf32>
    %74 = math.sqrt %73 : vector<8x256xf32>
    %cst_20 = arith.constant 6.28318548 : f32
    %75 = vector.broadcast %cst_20 : f32 to vector<8x256xf32>
    %76 = arith.mulf %75, %70 : vector<8x256xf32>
    %77 = math.cos %76 : vector<8x256xf32>
    %78 = arith.mulf %74, %77 : vector<8x256xf32>
    %c0_21 = arith.constant 0 : index
    %c0_22 = arith.constant 0 : index
    %79 = vector.load %arg3[%c0_21, %c0_22] : memref<8x2xf32, #tpu.memory_space<vmem>>, vector<8x2xf32>
    %80 = vector.extract_strided_slice %79 {offsets = [0, 0], sizes = [8, 1], strides = [1, 1]} : vector<8x2xf32> to vector<8x1xf32>
    %81 = vector.extract_strided_slice %79 {offsets = [0, 1], sizes = [8, 1], strides = [1, 1]} : vector<8x2xf32> to vector<8x1xf32>
    %82 = vector.broadcast %80 : vector<8x1xf32> to vector<8x256xf32>
    %83 = arith.mulf %82, %0 : vector<8x256xf32>
    %84 = vector.broadcast %16 : vector<8x1xf32> to vector<8x256xf32>
    %85 = arith.mulf %84, %78 : vector<8x256xf32>
    %86 = vector.broadcast %7 : vector<8x1xf32> to vector<8x256xf32>
    %87 = arith.addf %86, %85 : vector<8x256xf32>
    %88 = vector.broadcast %81 : vector<8x1xf32> to vector<8x256xf32>
    %89 = arith.mulf %88, %87 : vector<8x256xf32>
    %90 = arith.addf %83, %89 : vector<8x256xf32>
    %c0_23 = arith.constant 0 : index
    %c0_24 = arith.constant 0 : index
    %91 = vector.load %arg4[%c0_23, %c0_24] : memref<8x256xf32, #tpu.memory_space<vmem>>, vector<8x256xf32>
    tpu.vector_store %arg4[%c0_23, %c0_24], %90 {strides = array<i32>} : memref<8x256xf32, #tpu.memory_space<vmem>>, vector<8x256xf32>,
    return
  }
  func.func @transform_0(%arg0: i32, %arg1: memref<1xi32, #tpu.memory_space<smem>>) -> (i32, i32) {
    %c0_i32 = arith.constant 0 : i32
    %c0_i32_0 = arith.constant 0 : i32
    return %arg0, %c0_i32 : i32, i32
  }
  func.func @transform_1(%arg0: i32, %arg1: memref<1xi32, #tpu.memory_space<smem>>) -> (i32, i32) {
    %c0_i32 = arith.constant 0 : i32
    %c0_i32_0 = arith.constant 0 : i32
    return %arg0, %c0_i32 : i32, i32
  }
  func.func @transform_2(%arg0: i32, %arg1: memref<1xi32, #tpu.memory_space<smem>>) -> (i32, i32) {
    %c0_i32 = arith.constant 0 : i32
    %c0_i32_0 = arith.constant 0 : i32
    return %arg0, %c0_i32 : i32, i32
  }
}

</mosaic_0001>

<bundles_post_ra>
// kernel: gaussian_dropout2d.3
= control target key start
LH: loop header
LB: loop body
LE: loop exit
PB: predicated region body
PF: predicated region fallthrough
CT: control target
= control target key end

     0   :  { %v38_v0 = vlaneseq  ;;  %v403_v3 = vmov 0   ;;  %v404_v5 = vmov 1   ;;  %s571_s1 = inlined_call_operand.vmem [shape: f32[8,256], index: 1, kind: input, shape index: {}]   ;;  %s572_s2 = inlined_call_operand.vmem [shape: f32[8,2], index: 2, kind: input, shape index: {}]   ;;  %s573_s0 = inlined_call_operand.<no memory space> [shape: s32[1], index: 0, kind: input, shape index: {}]   ;;  %s574_s3 = inlined_call_operand.vmem [shape: f32[8,256], index: 3, kind: output, shape index: {}]  }
   0x1   :  { %v434_v1 = vld [vmem:[%s571_s1] sm:$0xff]  ;;  %v439_v2 = vld [vmem:[%s571_s1 + $0x8] sm:$0xff]  ;;  %382 = vset.pattern.permute.xlu1 %v403_v3  ;;  %384 = vset.pattern.permute.xlu0 %v404_v5  ;;  %s37_s19 = smul.u32 2654435761, %s573_s0 }
   0x2   :  { %v332_v4 = vld [vmem:[%s572_s2] sm:$0xff]  ;;  %v15_v6 = vadd.f32 %v439_v2, %v434_v1  ;;  %v18_v7 = vmul.f32 %v434_v1, %v434_v1  ;;  %v19_v8 = vmul.f32 %v439_v2, %v439_v2  ;;  %v39_v9 = vshrl.u32 %v38_v0, 7 }
   0x3   :  { %335 = vperm.xlu1 %382, %v332_v4   ;;  %v44_v10 = vand.u32 127, %v38_v0  ;;  %v49_v14 = vstv %s37_s19  ;;  %v405_v0 = vmov 683565275  }
   0x4   :  { %16 = vadd.xlane.f32.xlu0 %v15_v6  ;;  %v20_v11 = vadd.f32 %v19_v8, %v18_v7  ;;  %v46_v12 = vmul.u32 256, %v39_v9  ;;  %v407_v6 = vmov 2131351028   ;;  %v408_v8 = vmov 2102212464  }
   0x5   :  { %v45_v13 = vadd.s32 128, %v44_v10 }
   0x6   :  { %v47_v15 = vadd.s32 %v46_v12, %v44_v10  ;;  %v409_v10 = vmov 920167782  }
   0x7   :  { %383 = vset.pattern.permute.xlu1 %v404_v5  ;;  %v48_v16 = vadd.s32 %v46_v12, %v45_v13 }
   0x8   :  { %345 = vperm.xlu1 %383, %v332_v4   ;;  %21 = vadd.xlane.f32.xlu0 %v20_v11  ;;  %v453_v17 = vadd.s32 %v49_v14, %v47_v15  ;;  %v406_v4 = vmov 2475754826  }
   0x9   :  { %v455_v18 = vadd.s32 %v49_v14, %v48_v16 }
   0xa   :  { %v76_v19 = vxor.u32 2246822519, %v453_v17 }
   0xb   :  { %v77_v20 = vxor.u32 2246822519, %v455_v18 }
   0xc   :  { %v78_v21 = vshrl.u32 %v76_v19, 16 }
   0xd   :  { %v79_v22 = vshrl.u32 %v77_v20, 16 }
   0xe   :  { %v80_v23 = vxor.u32 %v78_v21, %v76_v19  ;;  %v410_v21 = vmov 1326507024  }
   0xf   :  { %v81_v24 = vxor.u32 %v79_v22, %v77_v20 }
  0x10   :  { %v82_v25 = vmul.u32 2146121005, %v80_v23 }
  0x11   :  { %v83_v26 = vmul.u32 2146121005, %v81_v24 }
  0x12   :  { %v84_v27 = vshrl.u32 %v82_v25, 15 }
  0x13   :  { %v85_v28 = vshrl.u32 %v83_v26, 15 }
  0x14   :  { %v86_v29 = vxor.u32 %v84_v27, %v82_v25 }
  0x15   :  { %v87_v30 = vxor.u32 %v85_v28, %v83_v26 }
  0x16   :  { %v88_v31 = vmul.u32 2221713035, %v86_v29 }
  0x17   :  { %v89_v32 = vmul.u32 2221713035, %v87_v30 }
  0x18   :  { %v90_v33 = vshrl.u32 %v88_v31, 16 }
  0x19   :  { %v91_v34 = vshrl.u32 %v89_v32, 16 }
  0x1a   :  { %v92_v35 = vxor.u32 %v90_v33, %v88_v31 }
  0x1b   :  { %v93_v36 = vxor.u32 %v91_v34, %v89_v32 }
  0x1c   :  { %v94_v37 = vshrl.u32 %v92_v35, 8 }
  0x1d   :  { %v95_v38 = vshrl.u32 %v93_v36, 8 }
  0x1e   :  { %v96_v39 = vcvt.s32.f32 %v94_v37 }
  0x1f   :  { %v97_v40 = vcvt.s32.f32 %v95_v38 }
  0x20   :  { %v98_v41 = vmul.f32 5.9604645e-08, %v96_v39 }
  0x21   :  { %v99_v42 = vmul.f32 5.9604645e-08, %v97_v40 }
  0x22   :  { %v100_v43 = vadd.f32 2.9802322e-08, %v98_v41 }
  0x23   :  { %v101_v44 = vadd.f32 2.9802322e-08, %v99_v42 }
  0x24   :  { %v459_v45 = vmul.f32 6.2831855, %v100_v43 }
  0x25   :  { %v461_v46 = vmul.f32 6.2831855, %v101_v44 }
  0x26   :  { %v127_v47 = vand.u32 2139095040, %v459_v45  ;;  %v124_v49 = vand.u32 2147483647, %v459_v45  ;;  %vm126_vm14 = vcmp.lt.s32.totalorder %v459_v45, 0 }
  0x27   :  { %v230_v48 = vand.u32 2139095040, %v461_v46  ;;  %v227_v57 = vand.u32 2147483647, %v461_v46  ;;  %vm229_vm15 = vcmp.lt.s32.totalorder %v461_v46, 0 }
  0x28   :  { %v128_v50 = vshrl.u32 %v127_v47, 23  ;;  %v131_v54 = vand.u32 8388607, %v124_v49 }
  0x29   :  { %v231_v51 = vshrl.u32 %v230_v48, 23  ;;  %v234_v62 = vand.u32 8388607, %v227_v57 }
  0x2a   :  { %v358_v52 = vadd.s32 4294967169, %v128_v50  ;;  %v132_v59 = vor.u32 8388608, %v131_v54 }
  0x2b   :  { %v362_v53 = vadd.s32 4294967169, %v231_v51  ;;  %v235_v39 = vor.u32 8388608, %v234_v62 }
  0x2c   :  { %v134_v55 = vadd.s32 1, %v358_v52  ;;  %v471_v12 = vshll.u32 %v132_v59, 8 }
  0x2d   :  { %v237_v56 = vadd.s32 1, %v362_v53 }
  0x2e   :  { %vm135_vm0 = vcmp.gt.s32.totalorder %v134_v55, 0 }
  0x2f   :  { %v136_v58 = vsel %vm135_vm0, %v134_v55, 0  ;;  %vm238_vm1 = vcmp.gt.s32.totalorder %v237_v56, 0  ;;  %v275_v55 = vshll.u32 %v235_v39, 8  ;;  %vm522_vm0 = vcmp.le.f32.partialorder %v124_v49, 0.7853982 }
  0x30   :  { %v138_v60 = vand.u32 31, %v136_v58  ;;  %v137_v61 = vshrl.u32 %v136_v58, 5  ;;  %v239_v13 = vsel %vm238_vm1, %v237_v56, 0  ;;  %vm530_vm1 = vcmp.le.f32.partialorder %v227_v57, 0.7853982 }
  0x31   :  { %v241_v28 = vand.u32 31, %v239_v13  ;;  %v240_v52 = vshrl.u32 %v239_v13, 5 }
  0x32   :  { %v139_v63 = vsub.s32 32, %v138_v60  ;;  %v141_v3 = vshll.u32 %v405_v0, %v138_v60  ;;  %v144_v5 = vshll.u32 %v406_v4, %v138_v60  ;;  %v147_v7 = vshll.u32 %v407_v6, %v138_v60 }
  0x33   :  { %v150_v9 = vshll.u32 %v408_v8, %v138_v60  ;;  %v153_v11 = vshll.u32 %v409_v10, %v138_v60  ;;  %vm156_vm2 = vcmp.lt.s32.totalorder %v137_v61, 1  ;;  %vm157_vm3 = vcmp.lt.s32.totalorder %v137_v61, 2 }
  0x34   :  { %v140_v14 = vshrl.u32 %v405_v0, %v139_v63  ;;  %v142_v15 = vshrl.u32 %v406_v4, %v139_v63  ;;  %v145_v16 = vshrl.u32 %v407_v6, %v139_v63  ;;  %v148_v19 = vshrl.u32 %v408_v8, %v139_v63 }
  0x35   :  { %v151_v20 = vshrl.u32 %v409_v10, %v139_v63  ;;  %v154_v22 = vshrl.u32 %v410_v21, %v139_v63  ;;  %vm159_vm4 = vcmp.lt.s32.totalorder %v137_v61, 4  ;;  %vm158_vm5 = vcmp.lt.s32.totalorder %v137_v61, 3 }
  0x36   :  { %v143_v23 = vor.u32 %v142_v15, %v141_v3  ;;  %v146_v24 = vor.u32 %v145_v16, %v144_v5  ;;  %v149_v25 = vor.u32 %v148_v19, %v147_v7  ;;  %v242_v36 = vsub.s32 32, %v241_v28 }
  0x37   :  { %v152_v26 = vor.u32 %v151_v20, %v150_v9  ;;  %v155_v27 = vor.u32 %v154_v22, %v153_v11  ;;  %v244_v47 = vshll.u32 %v405_v0, %v241_v28  ;;  %v247_v53 = vshll.u32 %v406_v4, %v241_v28 }
  0x38   :  { %v160_v29 = vsel %vm156_vm2, %v140_v14, %v143_v23  ;;  %v161_v30 = vsel %vm159_vm4, %v149_v25, 2102212464  ;;  %v164_v31 = vsel %vm156_vm2, %v143_v23, %v146_v24  ;;  %v168_v32 = vsel %vm156_vm2, %v146_v24, %v149_v25 }
  0x39   :  { %v162_v33 = vsel %vm158_vm5, %v146_v24, %v161_v30  ;;  %v165_v34 = vsel %vm159_vm4, %v152_v26, 920167782  ;;  %v169_v35 = vsel %vm159_vm4, %v155_v27, 1326507024  ;;  %v245_v51 = vshrl.u32 %v406_v4, %v242_v36 }
  0x3a   :  { %v166_v37 = vsel %vm158_vm5, %v149_v25, %v165_v34  ;;  %v170_v38 = vsel %vm158_vm5, %v152_v26, %v169_v35  ;;  %v163_v42 = vsel %vm157_vm3, %v160_v29, %v162_v33  ;;  %v248_v54 = vshrl.u32 %v407_v6, %v242_v36 }
  0x3b   :  { %v167_v40 = vsel %vm157_vm3, %v164_v31, %v166_v37  ;;  %v171_v41 = vsel %vm157_vm3, %v168_v32, %v170_v38  ;;  %v179_v56 = vmul.u32 %v471_v12, %v163_v42  ;;  %v243_v58 = vshrl.u32 %v405_v0, %v242_v36 }
  0x3c   :  { %v477_v43 = vmul.u32.u64.low %v471_v12, %v171_v41  ;;  %v478_v44 = vmul.u32.u64.high %v471_v12, %v171_v41, %v477_v43  ;;  %v481_v48 = vmul.u32.u64.low %v471_v12, %v167_v40  ;;  %v482_v50 = vmul.u32.u64.high %v471_v12, %v167_v40, %v481_v48 }
  0x3d   :  { %v250_v59 = vshll.u32 %v407_v6, %v241_v28  ;;  %v251_v60 = vshrl.u32 %v408_v8, %v242_v36  ;;  %v246_v61 = vor.u32 %v245_v51, %v244_v47  ;;  %v249_v62 = vor.u32 %v248_v54, %v247_v53 }
  0x3e   :  { %vm181_vm6 = vc.u32 %v478_v44, %v481_v48  ;;  %v253_v63 = vshll.u32 %v408_v8, %v241_v28  ;;  %v182_v3 = vadd.s32 1, %v482_v50  ;;  %v254_v7 = vshrl.u32 %v409_v10, %v242_v36 }
  0x3f   :  { %v252_v5 = vor.u32 %v251_v60, %v250_v59  ;;  %v256_v9 = vshll.u32 %v409_v10, %v241_v28  ;;  %v257_v11 = vshrl.u32 %v410_v21, %v242_v36  ;;  %vm259_vm7 = vcmp.lt.s32.totalorder %v240_v52, 1 }
  0x40   :  { %vm260_vm8 = vcmp.lt.s32.totalorder %v240_v52, 2  ;;  %vm261_vm9 = vcmp.lt.s32.totalorder %v240_v52, 3  ;;  %v183_v4 = vsel %vm181_vm6, %v182_v3, %v482_v50  ;;  %v255_v0 = vor.u32 %v254_v7, %v253_v63 }
  0x41   :  { %vm262_vm10 = vcmp.lt.s32.totalorder %v240_v52, 4  ;;  %v263_v6 = vsel %vm259_vm7, %v243_v58, %v246_v61  ;;  %v184_v12 = vadd.s32 %v183_v4, %v179_v56  ;;  %v258_v13 = vor.u32 %v257_v11, %v256_v9 }
  0x42   :  { %v264_v14 = vsel %vm262_vm10, %v252_v5, 2102212464  ;;  %v267_v15 = vsel %vm259_vm7, %v246_v61, %v249_v62  ;;  %v268_v16 = vsel %vm262_vm10, %v255_v0, 920167782  ;;  %v271_v19 = vsel %vm259_vm7, %v249_v62, %v252_v5 }
  0x43   :  { %v265_v8 = vsel %vm261_vm9, %v249_v62, %v264_v14  ;;  %v185_v20 = vadd.s32 536870912, %v184_v12  ;;  %v269_v10 = vsel %vm261_vm9, %v252_v5, %v268_v16  ;;  %v272_v21 = vsel %vm262_vm10, %v258_v13, 1326507024 }
  0x44   :  { %v266_v22 = vsel %vm260_vm8, %v263_v6, %v265_v8  ;;  %v270_v23 = vsel %vm260_vm8, %v267_v15, %v269_v10  ;;  %v273_v24 = vsel %vm261_vm9, %v255_v0, %v272_v21  ;;  %v52_v31 = vshrl.u32 %v453_v17, 16 }
  0x45   :  { %v495_v25 = vshrl.u32 %v185_v20, 30  ;;  %v274_v26 = vsel %vm260_vm8, %v271_v19, %v273_v24  ;;  %v498_v27 = vmul.u32.u64.low %v275_v55, %v270_v23  ;;  %v499_v28 = vmul.u32.u64.high %v275_v55, %v270_v23, %v498_v27 }
  0x46   :  { %v501_v29 = vmul.u32.u64.low %v275_v55, %v274_v26  ;;  %v502_v30 = vmul.u32.u64.high %v275_v55, %v274_v26, %v501_v29  ;;  %v282_v33 = vmul.u32 %v275_v55, %v266_v22  ;;  %v53_v34 = vshrl.u32 %v455_v18, 16 }
  0x47   :  { %v187_v32 = vshll.u32 %v495_v25, 30  ;;  %v285_v35 = vadd.s32 1, %v499_v28  ;;  %v54_v37 = vxor.u32 %v52_v31, %v453_v17  ;;  %v180_v15 = vadd.s32 %v481_v48, %v478_v44 }
  0x48   :  { %vm284_vm11 = vc.u32 %v502_v30, %v498_v27  ;;  %v55_v40 = vxor.u32 %v53_v34, %v455_v18  ;;  %v283_v20 = vadd.s32 %v498_v27, %v502_v30  ;;  %vm216_vm10 = vweird.f32 %v459_v45 }
  0x49   :  { %v286_v36 = vsel %vm284_vm11, %v285_v35, %v499_v28  ;;  %v188_v38 = vsub.s32 %v184_v12, %v187_v32  ;;  %v56_v42 = vmul.u32 2146121005, %v54_v37  ;;  %vm319_vm11 = vweird.f32 %v461_v46 }
  0x4a   :  { %v287_v39 = vadd.s32 %v286_v36, %v282_v33  ;;  %v57_v50 = vmul.u32 2146121005, %v55_v40 }
  0x4b   :  { %v190_v43 = vsub.s32 0, %v188_v38  ;;  %v58_v52 = vshrl.u32 %v56_v42, 15 }
  0x4c   :  { %v288_v41 = vadd.s32 536870912, %v287_v39  ;;  %v59_v55 = vshrl.u32 %v57_v50, 15 }
  0x4d   :  { %v359_v53 = vmin.u32 %v190_v43, %v188_v38  ;;  %v60_v58 = vxor.u32 %v58_v52, %v56_v42 }
  0x4e   :  { %v512_v47 = vshrl.u32 %v288_v41, 30  ;;  %v61_v60 = vxor.u32 %v59_v55, %v57_v50 }
  0x4f   :  { %v192_v59 = vclz %v359_v53  ;;  %v62_v62 = vmul.u32 2221713035, %v60_v58 }
  0x50   :  { %v290_v51 = vshll.u32 %v512_v47, 30  ;;  %v63_v63 = vmul.u32 2221713035, %v61_v60  ;;  %v210_v60 = vsub.s32 4, %v495_v25 }
  0x51   :  { %v360_v18 = vadd.s32 4294967294, %v192_v59  ;;  %v64_v5 = vshrl.u32 %v62_v62, 16 }
  0x52   :  { %v291_v54 = vsub.s32 %v287_v39, %v290_v51  ;;  %v65_v7 = vshrl.u32 %v63_v63, 16 }
  0x53   :  { %vm361_vm12 = vcmp.lt.s32.totalorder %v360_v18, 0  ;;  %v66_v11 = vxor.u32 %v64_v5, %v62_v62 }
  0x54   :  { %v293_v56 = vsub.s32 0, %v291_v54  ;;  %v195_v9 = vsel %vm361_vm12, 0, %v360_v18  ;;  %v67_v4 = vxor.u32 %v65_v7, %v63_v63  ;;  %v211_v63 = vsel %vm126_vm14, %v210_v60, %v495_v25 }
  0x55   :  { %v200_v6 = vsub.s32 4294967266, %v195_v9  ;;  %v68_v12 = vshrl.u32 %v66_v11, 8  ;;  %v196_v8 = vsub.s32 32, %v195_v9  ;;  %v197_v23 = vshll.u32 %v188_v38, %v195_v9 }
  0x56   :  { %v363_v17 = vmin.u32 %v293_v56, %v291_v54  ;;  %v69_v14 = vshrl.u32 %v67_v4, 8  ;;  %v213_v4 = vsel %vm522_vm0, 0, %v211_v63 }
  0x57   :  { %v201_v16 = vadd.s32 127, %v200_v6  ;;  %v70_v19 = vcvt.s32.f32 %v68_v12  ;;  %v198_v24 = vshrl.u32 %v180_v15, %v196_v8  ;;  %v217_v25 = vand.u32 3, %v213_v4 }
  0x58   :  { %v295_v61 = vclz %v363_v17  ;;  %v71_v22 = vcvt.s32.f32 %v69_v14 }
  0x59   :  { %v202_v26 = vshll.u32 %v201_v16, 23  ;;  %v72_v28 = vmul.f32 5.9604645e-08, %v70_v19  ;;  %v199_v34 = vor.u32 %v198_v24, %v197_v23  ;;  %vm219_vm2 = vcmp.eq.s32.totalorder %v217_v25, 0 }
  0x5a   :  { %v364_v3 = vadd.s32 4294967294, %v295_v61  ;;  %v73_v33 = vmul.f32 5.9604645e-08, %v71_v22  ;;  %v313_v61 = vsub.s32 4, %v512_v47  ;;  %vm222_vm3 = vcmp.eq.s32.totalorder %v217_v25, 2 }
  0x5b   :  { %v203_v35 = vor.u32 4788187, %v202_v26  ;;  %v74_v36 = vadd.f32 2.9802322e-08, %v72_v28  ;;  %v206_v40 = vcvt.s32.f32 %v199_v34  ;;  %vm218_vm8 = vcmp.lt.s32.totalorder %v217_v25, 2 }
  0x5c   :  { %vm365_vm13 = vcmp.lt.s32.totalorder %v364_v3, 0  ;;  %v75_v37 = vadd.f32 2.9802322e-08, %v73_v33 }
  0x5d   :  { %v298_v0 = vsel %vm365_vm13, 0, %v364_v3  ;;  %v204_v39 = vand.u32 2147483647, %v203_v35  ;;  %385 = vlog2.f32 %v74_v36  ;;  %v314_v3 = vsel %vm229_vm15, %v313_v61, %v512_v47 }
  0x5e   :  { %v303_v13 = vsub.s32 4294967266, %v298_v0  ;;  %v299_v10 = vsub.s32 32, %v298_v0  ;;  %v300_v29 = vshll.u32 %v291_v54, %v298_v0  ;;  %387 = vlog2.f32 %v75_v37 }
  0x5f   :  { %v207_v38 = vmul.f32 %v206_v40, %v204_v39  ;;  %v316_v0 = vsel %vm530_vm1, 0, %v314_v3 }
  0x60   :  { %v304_v21 = vadd.s32 127, %v303_v13  ;;  %v301_v31 = vshrl.u32 %v283_v20, %v299_v10  ;;  %v320_v15 = vand.u32 3, %v316_v0 }
  0x61   :  { %v208_v42 = vxor.u32 2147483648, %v207_v38 }
  0x62   :  { %v305_v32 = vshll.u32 %v304_v21, 23  ;;  %v302_v44 = vor.u32 %v301_v31, %v300_v29  ;;  %vm322_vm4 = vcmp.eq.s32.totalorder %v320_v15, 0  ;;  %vm325_vm5 = vcmp.eq.s32.totalorder %v320_v15, 2 }
  0x63   :  { %v209_v52 = vsel %vm126_vm14, %v208_v42, %v207_v38  ;;  %vm321_vm9 = vcmp.lt.s32.totalorder %v320_v15, 2 }
  0x64   :  { %v306_v48 = vor.u32 4788187, %v305_v32  ;;  %v309_v30 = vcvt.s32.f32 %v302_v44  ;;  %v212_v49 = vsel %vm522_vm0, %v459_v45, %v209_v52 }
  0x65   :  { %389 = vcosq.f32 %v212_v49 }
  0x66   :  { %v307_v27 = vand.u32 2147483647, %v306_v48  ;;  %391 = vsinq.f32 %v212_v49 }
  0x67   :  { %v386_v50 = vpop.eup %385 }
  0x68   :  { %v310_v41 = vmul.f32 %v309_v30, %v307_v27  ;;  %v388_v53 = vpop.eup %387  ;;  %v103_v56 = vmul.f32 0.6931472, %v386_v50 }
  0x69   :  { %v105_v58 = vmul.f32 0.6931472, %v388_v53 }
  0x6a   :  { %v311_v43 = vxor.u32 2147483648, %v310_v41  ;;  %v106_v17 = vmul.f32 -2.0, %v103_v56 }
  0x6b   :  { %v107_v57 = vmul.f32 -2.0, %v105_v58 }
  0x6c   :  { %v312_v55 = vsel %vm229_vm15, %v311_v43, %v310_v41  ;;  %vm110_vm6 = vcmp.eq.f32.partialorder %v106_v17, inf  ;;  %vm112_vm12 = vcmp.eq.f32.partialorder %v106_v17, 0.0  ;;  %v113_v31 = vand.u32 2147483648, %v106_v17 }
  0x6d   :  { %v315_v59 = vsel %vm530_vm1, %v461_v46, %v312_v55  ;;  %vm117_vm7 = vcmp.eq.f32.partialorder %v107_v57, inf  ;;  %vm119_vm13 = vcmp.eq.f32.partialorder %v107_v57, 0.0  ;;  %v120_v32 = vand.u32 2147483648, %v107_v57 }
  0x6e   :  { %393 = vcosq.f32 %v315_v59 }
  0x6f   :  { %395 = vsinq.f32 %v315_v59  ;;  %v390_v9 = vpop.eup %389 }
  0x70   :  { %397 = vrsqrt.f32 %v106_v17  ;;  %v392_v6 = vpop.eup %391  ;;  %v223_v47 = vxor.u32 2147483648, %v390_v9 }
  0x71   :  { %399 = vrsqrt.f32 %v107_v57  ;;  %v220_v20 = vxor.u32 2147483648, %v392_v6 }
  0x72   :  { %v224_v26 = vsel %vm222_vm3, %v223_v47, %v392_v6 }
  0x73   :  { %v221_v24 = vsel %vm219_vm2, %v390_v9, %v220_v20 }
  0x74   :  { %v225_v35 = vsel %vm218_vm8, %v221_v24, %v224_v26 }
  0x75   :  { %v226_v39 = vsel %vm216_vm10, nan, %v225_v35 }
  0x78   :  { %v394_v12 = vpop.eup %393 }
  0x79   :  { %v396_v14 = vpop.eup %395  ;;  %v326_v21 = vxor.u32 2147483648, %v394_v12 }
  0x7a   :  { %v398_v16 = vpop.eup %397  ;;  %v323_v10 = vxor.u32 2147483648, %v396_v14 }
  0x7b   :  { %v400_v19 = vpop.eup %399  ;;  %v109_v22 = vmul.f32 %v398_v16, %v106_v17  ;;  %v327_v29 = vsel %vm325_vm5, %v326_v21, %v396_v14 }
  0x7c   :  { %v116_v23 = vmul.f32 %v400_v19, %v107_v57  ;;  %v324_v28 = vsel %vm322_vm4, %v394_v12, %v323_v10 }
  0x7d   :  { %v111_v33 = vsel %vm110_vm6, %v106_v17, %v109_v22  ;;  %v328_v36 = vsel %vm321_vm9, %v324_v28, %v327_v29 }
  0x7e   :  { %v118_v34 = vsel %vm117_vm7, %v107_v57, %v116_v23  ;;  %v114_v48 = vsel %vm112_vm12, %v113_v31, %v111_v33  ;;  %v329_v40 = vsel %vm319_vm11, nan, %v328_v36 }
  0x7f   :  { %v121_v37 = vsel %vm119_vm13, %v120_v32, %v118_v34  ;;  %v330_v38 = vmul.f32 %v226_v39, %v114_v48 }
  0x80   :  { %v331_v41 = vmul.f32 %v329_v40, %v121_v37 }
  0x82   :  { %v336_v30 = vpop.permute.xlu1 %335 }
  0x83   :  { %v338_v55 = vmul.f32 %v336_v30, %v434_v1  ;;  %v339_v56 = vmul.f32 %v336_v30, %v439_v2 }
  0x87   :  { %v346_v52 = vpop.permute.xlu1 %345 }
  0x91   :  { %v17_v62 = vpop.xlane.xlu0 %16 }
  0x92   :  { %v544_v18 = vmul.f32 0.00390625, %v17_v62 }
  0x94   :  { %v24_v5 = vmul.f32 %v544_v18, %v17_v62 }
  0x95   :  { %v22_v7 = vpop.xlane.xlu0 %21 }
  0x96   :  { %v25_v11 = vsub.f32 %v22_v7, %v24_v5 }
  0x98   :  { %v26_v13 = vmul.f32 0.003921569, %v25_v11 }
  0x9a   :  { %v27_v8 = vmax.f32 %v26_v13, 0.0 }
  0x9c   :  { %401 = vrsqrt.f32 %v27_v8  ;;  %vm30_vm14 = vcmp.eq.f32.partialorder %v27_v8, inf  ;;  %v33_v45 = vand.u32 2147483648, %v27_v8  ;;  %vm32_vm15 = vcmp.eq.f32.partialorder %v27_v8, 0.0 }
  0xa6   :  { %v402_v44 = vpop.eup %401 }
  0xa7   :  { %v29_v27 = vmul.f32 %v402_v44, %v27_v8 }
  0xa9   :  { %v31_v46 = vsel %vm30_vm14, %v27_v8, %v29_v27 }
  0xaa   :  { %v34_v42 = vsel %vm32_vm15, %v33_v45, %v31_v46 }
  0xab   :  { %v35_v43 = vmax.f32 %v34_v42, 1e-06 }
  0xad   :  { %v340_v50 = vmul.f32 %v330_v38, %v35_v43  ;;  %v341_v51 = vmul.f32 %v331_v41, %v35_v43 }
  0xaf   :  { %v342_v53 = vadd.f32 %v340_v50, %v544_v18  ;;  %v343_v54 = vadd.f32 %v341_v51, %v544_v18 }
  0xb1   :  { %v348_v49 = vmul.f32 %v346_v52, %v342_v53  ;;  %v349_v58 = vmul.f32 %v346_v52, %v343_v54 }
  0xb3   :  { %v350_v59 = vadd.f32 %v348_v49, %v338_v55  ;;  %v351_v17 = vadd.f32 %v349_v58, %v339_v56 }
  0xb5   :  { %352 = vst [vmem:[%s574_s3] sm:$0xff] %v350_v59  ;;  %353 = vst [vmem:[%s574_s3 + $0x8] sm:$0xff] %v351_v17 }

</bundles_post_ra>
